<compile_context>
chip_gen: v7x
topology: tpu7x:2x2x1
jax: 0.10.0
libtpu: 0.0.40
codegen_flags: <defaults>
</compile_context>

<pallas_src>
import functools

import jax
import jax.numpy as jnp
from jax.experimental import pallas as pl
from jax.experimental.pallas import tpu as pltpu

BN_EPS = 1e-5


def _graph_conv_kernel(x_ref, a_ref, w_ref, gb_ref, o_ref, stats_ref, *, inv_n):
    """One (phase, batch_tile) grid step.

    x:(Bt*J,Cin) bf16   a:(Bt*J,Bt*J)=I_Bt⊗adj bf16 (resident)   w:(Cin,Cout) bf16
    gb:(2,Cout) f32 [gamma;beta]   o:(Bt*J,Cout) f32   stats:(2,Cout) f32 scratch
    """
    phase = pl.program_id(0)
    tile = pl.program_id(1)

    # --- propagation: two MXU pushes, reassociated (adj @ x) @ W  (Cin < Cout) ---
    ax = jnp.dot(a_ref[...], x_ref[...], preferred_element_type=jnp.float32)      # (Bt*J, Cin)
    y = jnp.dot(ax.astype(w_ref.dtype), w_ref[...],
                preferred_element_type=jnp.float32)                               # (Bt*J, Cout)

    # --- phase 0: accumulate BN statistics (sum, sum of squares) ---
    @pl.when((phase == 0) & (tile == 0))
    def _():
        stats_ref[...] = jnp.zeros_like(stats_ref)

    @pl.when(phase == 0)
    def _():
        stats_ref[0:1, :] += jnp.sum(y, axis=0, keepdims=True)
        stats_ref[1:2, :] += jnp.sum(y * y, axis=0, keepdims=True)
        o_ref[...] = y.astype(o_ref.dtype)       # placeholder; overwritten in phase 1

    # --- phase 1: fused normalize + affine + ReLU (scale/shift = one FMA) ---
    @pl.when(phase == 1)
    def _():
        mean = stats_ref[0:1, :] * inv_n                                           # (1, Cout)
        var = stats_ref[1:2, :] * inv_n - mean * mean                              # biased var
        scale = gb_ref[0:1, :] * jax.lax.rsqrt(var + BN_EPS)
        shift = gb_ref[1:2, :] - mean * scale
        o_ref[...] = jnp.maximum(y * scale + shift, 0.0).astype(o_ref.dtype)


def _pick_batch_tile(B, J, target_rows=128):
    """Largest Bt <= target_rows//J with Bt | B (keeps BN stats exact, no padding)."""
    bt = max(1, target_rows // J)
    bt = min(bt, B)
    while B % bt != 0:
        bt -= 1
    return bt


def graph_conv_forward(x, adj, W, bias, gamma, beta):
    # `bias` accepted for API parity with PGraphConv but intentionally unused: a
    # per-channel constant added before TRAINING-mode BatchNorm is exactly
    # cancelled by the mean subtraction.  (Not valid for eval/running stats.)
    del bias
    B, J, Cin = x.shape
    Cout = W.shape[1]

    Bt = _pick_batch_tile(B, J)
    n_tiles = B // Bt
    rows = Bt * J
    assert rows % 8 == 0, "sublane tiling requires Bt*J % 8 == 0"

    # Wrapper-side one-time prep: bf16 MXU operands, fixed-size block-diagonal
    # adjacency (constant in B), merged BN affine params.
    x2 = x.reshape(B * J, Cin).astype(jnp.bfloat16)
    adj_blk = jnp.kron(jnp.eye(Bt, dtype=jnp.float32), adj).astype(jnp.bfloat16)   # (rows, rows)
    w_bf = W.astype(jnp.bfloat16)
    gb = jnp.concatenate([gamma, beta], axis=0).astype(jnp.float32)                # (2, Cout)

    kernel = functools.partial(_graph_conv_kernel, inv_n=1.0 / float(B * J))

    out2 = pl.pallas_call(
        kernel,
        out_shape=jax.ShapeDtypeStruct((B * J, Cout), x.dtype),
        grid_spec=pltpu.PrefetchScalarGridSpec(
            num_scalar_prefetch=0,
            grid=(2, n_tiles),                                     # (phase, batch tile)
            in_specs=[
                pl.BlockSpec((rows, Cin), lambda p, t: (t, 0)),    # x tile (pipelined)
                pl.BlockSpec((rows, rows), lambda p, t: (0, 0)),   # resident block-diag adjacency
                pl.BlockSpec((Cin, Cout), lambda p, t: (0, 0)),    # resident weights
                pl.BlockSpec((2, Cout), lambda p, t: (0, 0)),      # resident gamma/beta
            ],
            out_specs=pl.BlockSpec((rows, Cout), lambda p, t: (t, 0)),
            scratch_shapes=[pltpu.VMEM((2, Cout), jnp.float32)],   # BN sum / sumsq
        ),
        compiler_params=pltpu.CompilerParams(
            # both axes are reductions w.r.t. the shared BN-stats scratch
            dimension_semantics=("arbitrary", "arbitrary"),
            # explicit limit: safe on every generation (v7x physical VMEM is 64 MiB)
            vmem_limit_bytes=32 * 1024 * 1024,
        ),
    )(x2, adj_blk, w_bf, gb)

    return out2.reshape(B, J, Cout)


def _reference_forward(x, adj, W, bias, gamma, beta):
    """Pure-JAX f32 reference mirroring the PyTorch module forward (bias included)."""
    y = jnp.einsum("jk,bkd->bjd", adj, jnp.einsum("bjc,cd->bjd", x, W)) + bias     # PGraphConv
    mean = jnp.mean(y, axis=(0, 1), keepdims=True)                                 # BN (train stats)
    var = jnp.mean((y - mean) ** 2, axis=(0, 1), keepdims=True)
    y = (y - mean) * jax.lax.rsqrt(var + BN_EPS) * gamma + beta
    return jnp.maximum(y, 0.0)                                                     # ReLU


if __name__ == "__main__":
    B, J, Cin, Cout = 2, 16, 8, 32          # batch, num_joints, input_dim, output_dim

    key = jax.random.PRNGKey(0)
    kx, kw, kb, kg, kbt = jax.random.split(key, 5)

    # Input activations (B, num_joints, input_dim)
    x = jax.random.normal(kx, (B, J, Cin), dtype=jnp.float32)

    # PGraphConv parameters: W xavier-ish, bias nonzero (shows the BN bias cancellation is exact).
    limit = (6.0 / (Cin + Cout)) ** 0.5
    W = jax.random.uniform(kw, (Cin, Cout), minval=-limit, maxval=limit, dtype=jnp.float32)
    bias = jax.random.uniform(kb, (1, Cout), minval=-0.5, maxval=0.5, dtype=jnp.float32)

    # Fixed skeleton-like adjacency: ring + self-loops, row-normalized
    eye = jnp.eye(J, dtype=jnp.float32)
    ring = jnp.roll(eye, 1, axis=1) + jnp.roll(eye, -1, axis=1)
    adj = eye + ring
    adj = adj / jnp.sum(adj, axis=1, keepdims=True)

    # Non-trivial BatchNorm affine params for a stronger check
    gamma = 1.0 + 0.1 * jax.random.normal(kg, (1, Cout), dtype=jnp.float32)
    beta = 0.1 * jax.random.normal(kbt, (1, Cout), dtype=jnp.float32)

    out = graph_conv_forward(x, adj, W, bias, gamma, beta)
    out = jax.block_until_ready(out)

    ref = _reference_forward(x, adj, W, bias, gamma, beta)
    assert out.shape == (B, J, Cout)
    # bf16 MXU operands vs f32 reference -> looser tolerance than the all-f32 version
    assert jnp.allclose(out, ref, atol=5e-2, rtol=5e-2), "mismatch vs JAX reference"

    print("KERNEL_OK")
</pallas_src>

<mosaic_0001>
module attributes {stable_mosaic.version = 11 : i64} {
  func.func @_graph_conv_kernel(%arg0: i32, %arg1: i32, %arg2: memref<32x8xbf16, #tpu.memory_space<vmem>>, %arg3: memref<32x32xbf16, #tpu.memory_space<vmem>>, %arg4: memref<8x32xbf16, #tpu.memory_space<vmem>>, %arg5: memref<2x32xf32, #tpu.memory_space<vmem>>, %arg6: memref<32x32xf32, #tpu.memory_space<vmem>>, %arg7: memref<2x32xf32, #tpu.memory_space<vmem>>) attributes {dimension_semantics = [#tpu.dimension_semantics<arbitrary>, #tpu.dimension_semantics<arbitrary>], iteration_bounds = array<i64: 2, 1>, scalar_prefetch = 0 : i64, scratch_operands = 1 : i64, tpu.core_type = #tpu.core_type<tc>, window_params = [{transform_indices = @transform_0, window_bounds = array<i64: 32, 8>}, {pipeline_mode = #tpu.pipeline_mode<synchronous>, transform_indices = @transform_1, window_bounds = array<i64: 32, 32>}, {pipeline_mode = #tpu.pipeline_mode<synchronous>, transform_indices = @transform_2, window_bounds = array<i64: 8, 32>}, {pipeline_mode = #tpu.pipeline_mode<synchronous>, transform_indices = @transform_3, window_bounds = array<i64: 2, 32>}, {transform_indices = @transform_4, window_bounds = array<i64: 32, 32>}]} {
    %c0 = arith.constant 0 : index
    %c0_0 = arith.constant 0 : index
    %0 = vector.load %arg3[%c0, %c0_0] : memref<32x32xbf16, #tpu.memory_space<vmem>>, vector<32x32xbf16>
    %c0_1 = arith.constant 0 : index
    %c0_2 = arith.constant 0 : index
    %1 = vector.load %arg2[%c0_1, %c0_2] : memref<32x8xbf16, #tpu.memory_space<vmem>>, vector<32x8xbf16>
    %cst = arith.constant dense<0.000000e+00> : vector<32x8xf32>
    %2 = tpu.matmul %0, %1, %cst {dimension_numbers = #tpu.dot_dimension_numbers<[1], [0], [0], [1], [0, 0, 1, 1], [], []>} : vector<32x32xbf16>, vector<32x8xbf16>, vector<32x8xf32> -> vector<32x8xf32>
    %3 = arith.truncf %2 : vector<32x8xf32> to vector<32x8xbf16>
    %c0_3 = arith.constant 0 : index
    %c0_4 = arith.constant 0 : index
    %4 = vector.load %arg4[%c0_3, %c0_4] : memref<8x32xbf16, #tpu.memory_space<vmem>>, vector<8x32xbf16>
    %cst_5 = arith.constant dense<0.000000e+00> : vector<32x32xf32>
    %5 = tpu.matmul %3, %4, %cst_5 {dimension_numbers = #tpu.dot_dimension_numbers<[1], [0], [0], [1], [0, 0, 1, 1], [], []>} : vector<32x8xbf16>, vector<8x32xbf16>, vector<32x32xf32> -> vector<32x32xf32>
    %c0_i32 = arith.constant 0 : i32
    %6 = arith.cmpi eq, %arg0, %c0_i32 : i32
    %c0_i32_6 = arith.constant 0 : i32
    %7 = arith.cmpi eq, %arg1, %c0_i32_6 : i32
    %8 = arith.andi %6, %7 : i1
    %9 = arith.extui %8 : i1 to i32
    %c0_i32_7 = arith.constant 0 : i32
    %10 = arith.cmpi ne, %9, %c0_i32_7 : i32
    scf.if %10 {
      %cst_11 = arith.constant 0.000000e+00 : f32
      %17 = vector.broadcast %cst_11 : f32 to vector<2x32xf32>
      %c0_12 = arith.constant 0 : index
      %c0_13 = arith.constant 0 : index
      %18 = vector.load %arg7[%c0_12, %c0_13] : memref<2x32xf32, #tpu.memory_space<vmem>>, vector<2x32xf32>
      tpu.vector_store %arg7[%c0_12, %c0_13], %17 {strides = array<i32>} : memref<2x32xf32, #tpu.memory_space<vmem>>, vector<2x32xf32>,
    } else {
    }
    %c0_i32_8 = arith.constant 0 : i32
    %11 = arith.cmpi eq, %arg0, %c0_i32_8 : i32
    %12 = arith.extui %11 : i1 to i32
    %c0_i32_9 = arith.constant 0 : i32
    %13 = arith.cmpi ne, %12, %c0_i32_9 : i32
    scf.if %13 {
      %c0_11 = arith.constant 0 : index
      %c0_12 = arith.constant 0 : index
      %17 = vector.load %arg7[%c0_11, %c0_12] : memref<2x32xf32, #tpu.memory_space<vmem>>, vector<1x32xf32>
      %cst_13 = arith.constant dense<0.000000e+00> : vector<32xf32>
      %18 = vector.multi_reduction <add>, %5, %cst_13 [0] : vector<32x32xf32> to vector<32xf32>
      %19 = vector.shape_cast %18 : vector<32xf32> to vector<1x32xf32>
      %20 = arith.addf %17, %19 : vector<1x32xf32>
      %c0_14 = arith.constant 0 : index
      %c0_15 = arith.constant 0 : index
      %21 = vector.load %arg7[%c0_14, %c0_15] : memref<2x32xf32, #tpu.memory_space<vmem>>, vector<1x32xf32>
      tpu.vector_store %arg7[%c0_14, %c0_15], %20 {strides = array<i32>} : memref<2x32xf32, #tpu.memory_space<vmem>>, vector<1x32xf32>,
      %c1 = arith.constant 1 : index
      %c0_16 = arith.constant 0 : index
      %22 = vector.load %arg7[%c1, %c0_16] : memref<2x32xf32, #tpu.memory_space<vmem>>, vector<1x32xf32>
      %23 = arith.mulf %5, %5 : vector<32x32xf32>
      %cst_17 = arith.constant dense<0.000000e+00> : vector<32xf32>
      %24 = vector.multi_reduction <add>, %23, %cst_17 [0] : vector<32x32xf32> to vector<32xf32>
      %25 = vector.shape_cast %24 : vector<32xf32> to vector<1x32xf32>
      %26 = arith.addf %22, %25 : vector<1x32xf32>
      %c1_18 = arith.constant 1 : index
      %c0_19 = arith.constant 0 : index
      %27 = vector.load %arg7[%c1_18, %c0_19] : memref<2x32xf32, #tpu.memory_space<vmem>>, vector<1x32xf32>
      tpu.vector_store %arg7[%c1_18, %c0_19], %26 {strides = array<i32>} : memref<2x32xf32, #tpu.memory_space<vmem>>, vector<1x32xf32>,
      %c0_20 = arith.constant 0 : index
      %c0_21 = arith.constant 0 : index
      %28 = vector.load %arg6[%c0_20, %c0_21] : memref<32x32xf32, #tpu.memory_space<vmem>>, vector<32x32xf32>
      tpu.vector_store %arg6[%c0_20, %c0_21], %5 {strides = array<i32>} : memref<32x32xf32, #tpu.memory_space<vmem>>, vector<32x32xf32>,
    } else {
    }
    %c1_i32 = arith.constant 1 : i32
    %14 = arith.cmpi eq, %arg0, %c1_i32 : i32
    %15 = arith.extui %14 : i1 to i32
    %c0_i32_10 = arith.constant 0 : i32
    %16 = arith.cmpi ne, %15, %c0_i32_10 : i32
    scf.if %16 {
      %c0_11 = arith.constant 0 : index
      %c0_12 = arith.constant 0 : index
      %17 = vector.load %arg7[%c0_11, %c0_12] : memref<2x32xf32, #tpu.memory_space<vmem>>, vector<1x32xf32>
      %cst_13 = arith.constant 3.125000e-02 : f32
      %18 = vector.broadcast %cst_13 : f32 to vector<1x32xf32>
      %19 = arith.mulf %17, %18 : vector<1x32xf32>
      %c1 = arith.constant 1 : index
      %c0_14 = arith.constant 0 : index
      %20 = vector.load %arg7[%c1, %c0_14] : memref<2x32xf32, #tpu.memory_space<vmem>>, vector<1x32xf32>
      %cst_15 = arith.constant 3.125000e-02 : f32
      %21 = vector.broadcast %cst_15 : f32 to vector<1x32xf32>
      %22 = arith.mulf %20, %21 : vector<1x32xf32>
      %23 = arith.mulf %19, %19 : vector<1x32xf32>
      %24 = arith.subf %22, %23 : vector<1x32xf32>
      %c0_16 = arith.constant 0 : index
      %c0_17 = arith.constant 0 : index
      %25 = vector.load %arg5[%c0_16, %c0_17] : memref<2x32xf32, #tpu.memory_space<vmem>>, vector<1x32xf32>
      %cst_18 = arith.constant 9.99999974E-6 : f32
      %26 = vector.broadcast %cst_18 : f32 to vector<1x32xf32>
      %27 = arith.addf %24, %26 : vector<1x32xf32>
      %28 = math.rsqrt %27 : vector<1x32xf32>
      %29 = arith.mulf %25, %28 : vector<1x32xf32>
      %c1_19 = arith.constant 1 : index
      %c0_20 = arith.constant 0 : index
      %30 = vector.load %arg5[%c1_19, %c0_20] : memref<2x32xf32, #tpu.memory_space<vmem>>, vector<1x32xf32>
      %31 = arith.mulf %19, %29 : vector<1x32xf32>
      %32 = arith.subf %30, %31 : vector<1x32xf32>
      %33 = vector.broadcast %29 : vector<1x32xf32> to vector<32x32xf32>
      %34 = arith.mulf %5, %33 : vector<32x32xf32>
      %35 = vector.broadcast %32 : vector<1x32xf32> to vector<32x32xf32>
      %36 = arith.addf %34, %35 : vector<32x32xf32>
      %cst_21 = arith.constant 0.000000e+00 : f32
      %37 = vector.broadcast %cst_21 : f32 to vector<32x32xf32>
      %38 = arith.maximumf %36, %37 : vector<32x32xf32>
      %c0_22 = arith.constant 0 : index
      %c0_23 = arith.constant 0 : index
      %39 = vector.load %arg6[%c0_22, %c0_23] : memref<32x32xf32, #tpu.memory_space<vmem>>, vector<32x32xf32>
      tpu.vector_store %arg6[%c0_22, %c0_23], %38 {strides = array<i32>} : memref<32x32xf32, #tpu.memory_space<vmem>>, vector<32x32xf32>,
    } else {
    }
    return
  }
  func.func @transform_0(%arg0: i32, %arg1: i32) -> (i32, i32) {
    %c0_i32 = arith.constant 0 : i32
    %c0_i32_0 = arith.constant 0 : i32
    return %arg1, %c0_i32 : i32, i32
  }
  func.func @transform_1(%arg0: i32, %arg1: i32) -> (i32, i32) {
    %c0_i32 = arith.constant 0 : i32
    %c0_i32_0 = arith.constant 0 : i32
    %c0_i32_1 = arith.constant 0 : i32
    return %c0_i32, %c0_i32_0 : i32, i32
  }
  func.func @transform_2(%arg0: i32, %arg1: i32) -> (i32, i32) {
    %c0_i32 = arith.constant 0 : i32
    %c0_i32_0 = arith.constant 0 : i32
    %c0_i32_1 = arith.constant 0 : i32
    return %c0_i32, %c0_i32_0 : i32, i32
  }
  func.func @transform_3(%arg0: i32, %arg1: i32) -> (i32, i32) {
    %c0_i32 = arith.constant 0 : i32
    %c0_i32_0 = arith.constant 0 : i32
    %c0_i32_1 = arith.constant 0 : i32
    return %c0_i32, %c0_i32_0 : i32, i32
  }
  func.func @transform_4(%arg0: i32, %arg1: i32) -> (i32, i32) {
    %c0_i32 = arith.constant 0 : i32
    %c0_i32_0 = arith.constant 0 : i32
    return %arg1, %c0_i32 : i32, i32
  }
}

</mosaic_0001>

<bundles_post_ra>
// kernel: tpu_custom_call.1
= control target key start
LH: loop header
LB: loop body
LE: loop exit
PB: predicated region body
PF: predicated region fallthrough
CT: control target
= control target key end

     0   :  { %9 = vsyncpa [#allocation4], 0  ;;  %s677_s15 = smov 0   ;;  %s679_s16 = smov 0   ;;  %s805_s0 = inlined_call_operand.vmem [shape: bf16[32,8], index: 0, kind: input, shape index: {}]   ;;  %s806_s1 = inlined_call_operand.vmem [shape: bf16[32,32], index: 1, kind: input, shape index: {}]   ;;  %s807_s2 = inlined_call_operand.vmem [shape: bf16[8,32], index: 2, kind: input, shape index: {}]   ;;  %s808_s3 = inlined_call_operand.vmem [shape: f32[2,32], index: 3, kind: input, shape index: {}]   ;;  %s809_s4 = inlined_call_operand.hbm [shape: f32[32,32], index: 4, kind: output, shape index: {}]  }
   0x1   :  { %s681_s17 = smov 0  }
   0x2 LB: > { %s512_s18 = sadd.s32 4294967295, %s646_s17   ;;  %s27_s19 = sadd.s32 1, %s642_s16  ;;  %s646_s17 = sphi %s681_s17, %s15_s17   ;;  %s642_s16 = sphi %s679_s16, %s812_s16   ;;  %s638_s15 = sphi %s677_s15, %s811_s15  }
   0x3   : > { %p29_p0 = scmp.ge.s32.totalorder %s27_s19, 2  ;;  %p515_p1 = scmp.ge.s32.totalorder %s646_s17, 1 }
   0x4   : > { %p176_p2 = scmp.lt.s32.totalorder %s646_s17, 3 }
   0x5   : > { %s814_s19 = smov (%p29_p0, %s27_s19), 0 }
   0x6   : > { %p177_p3 = pnand %p515_p1, %p176_p2 }
   0x7   : > { %v588_v0 = vld [vmem:[%s805_s0] sm:$0xff] (!%p177_p3)   ;;  %v589_v1 = vld [vmem:[%s805_s0 + $0x8] sm:$0xff] (!%p177_p3)   ;;  %vm235_vm0 = vcmask (!%p177_p3), 261120   ;;  %vm301_vm1 = vcmask (!%p177_p3), 1043456   ;;  %vm294_vm2 = vcmask (!%p177_p3), 64512   ;;  %p354_p4 = scmp.eq.s32.totalorder (!%p177_p3), %s638_s15, 0 }
   0x8   : > { %180 = sbr.rel (%p177_p3) target bundleno = 539 (0x21b), region = 36  ;;  %539 = vmatprep.subr.bf16.mxu0 (!%p177_p3), %v588_v0  ;;  %v590_v2 = vld [vmem:[%s806_s1] sm:$0xff] (!%p177_p3)   ;;  %v591_v3 = vld [vmem:[%s806_s1 + $0x8] sm:$0xff] (!%p177_p3)  }
   0x9   : > { %540 = vmatpush3.bf16.msra.mxu0 (!%p177_p3), %v588_v0  ;;  %543 = vmatprep.mubr.msk.bf16.mxu0 (!%p177_p3), %vm235_vm0, %v590_v2  ;;  %v293_v4 = vld [vmem:[%s807_s2] sm:$0xf] (!%p177_p3) }
   0xa   : > { %541 = vmatprep.subr.bf16.mxu0 (!%p177_p3), %v589_v1  ;;  %553 = vmatprep.subr.msk.bf16.mxu1 (!%p177_p3), %vm301_vm1, %v293_v4  ;;  %v303_v5 = vsel (!%p177_p3), %vm301_vm1, %v293_v4, 0 }
   0xb   : > { %548 = vmatpush3.bf16.msra.mxu1 (!%p177_p3), %v303_v5 }
   0xd   : > { %542 = vmatpush3.bf16.msra.mxu0 (!%p177_p3), %v589_v1 }
   0xf   : > { %vm360_vm3 = vcmask (%p354_p4), 254976   ;;  %v648_v16 = vmov (%p354_p4), 0.0  }
  0x10   : > { %544 = vmatmul.mubr.msk.bf16.vlgmr.msra.gmra.mrb[0].mxu0 %vm235_vm0, %v591_v3  ;;  %361 = vst.msk [vmem:[#allocation2] sm:$0x3] (%p354_p4), %vm360_vm3, %v648_v16 }
  0xe3   : > { %v545_v6 = vpop.f32.mrb[0].mxu0 }
  0xe4   : > { %v276_v7 = vpop.f32.mrb[1].mxu0 }
  0xe5   : > { %v546_v8 = vpop.f32.mrb[2].mxu0 }
  0xe6   : > { %v292_v9 = vpack.c.bf16 %v546_v8, %v545_v6  ;;  %v279_v10 = vpop.f32.mrb[3].mxu0 }
  0xe7   : > { %v291_v11 = vpack.c.bf16 %v279_v10, %v276_v7 }
  0xe9   : > { %549 = vmatprep.mubr.msk.bf16.mxu1 %vm294_vm2, %v291_v11 }
  0xea   : > { %550 = vmatmul.mubr.msk.bf16.vlgmr.msra.gmra.mrb[0].mxu1 %vm294_vm2, %v292_v9 }
 0x1ba   : > { %359 = sbr.rel (!%p354_p4) target bundleno = 449 (0x1c1), region = 40 }
 0x1bd   : > { %v716_v12 = vpop.f32.mrb[0].mxu1 }
 0x1be   : > { %v718_v13 = vpop.f32.mrb[1].mxu1 }
 0x1bf   : > { %v720_v14 = vpop.f32.mrb[2].mxu1 }
 0x1c0   : > { %v722_v15 = vpop.f32.mrb[3].mxu1 }
 0x1c1 PF: > { %p525_p5 = scmp.ne.s32.totalorder %s638_s15, 0 }
 0x1c2   : > { %v366_v17 = vsel (!%p525_p5), %vm235_vm0, %v718_v13, 0.0  ;;  %v367_v18 = vsel (!%p525_p5), %vm235_vm0, %v722_v15, 0.0  ;;  %v369_v19 = vsel (!%p525_p5), %vm235_vm0, %v716_v12, 0.0  ;;  %402 = vst.msk [vmem:[#allocation3] sm:$0xff] (!%p525_p5), %vm235_vm0, %v718_v13  ;;  %403 = vst.msk [vmem:[#allocation3 + $0x8] sm:$0xff] (!%p525_p5), %vm235_vm0, %v722_v15  ;;  %v383_v21 = vmul.f32 (!%p525_p5), %v718_v13, %v718_v13 }
 0x1c3   : > { %364 = sbr.rel (%p525_p5) target bundleno = 475 (0x1db), region = 44  ;;  %404 = vst.msk [vmem:[#allocation3 + $0x10] sm:$0xff] (!%p525_p5), %vm235_vm0, %v716_v12  ;;  %405 = vst.msk [vmem:[#allocation3 + $0x18] sm:$0xff] (!%p525_p5), %vm235_vm0, %v720_v14  ;;  %v368_v20 = vadd.f32 (!%p525_p5), %v367_v18, %v366_v17  ;;  %v384_v22 = vmul.f32 (!%p525_p5), %v722_v15, %v722_v15  ;;  %v371_v23 = vsel (!%p525_p5), %vm235_vm0, %v720_v14, 0.0  ;;  %v385_v24 = vmul.f32 (!%p525_p5), %v716_v12, %v716_v12  ;;  %v365_v43 = vld [vmem:[#allocation2] sm:$0x1] (!%p525_p5) }
 0x1c4   : > { %v386_v25 = vmul.f32 (!%p525_p5), %v720_v14, %v720_v14  ;;  %v387_v27 = vsel (!%p525_p5), %vm235_vm0, %v383_v21, 0.0  ;;  %vm380_vm4 = vcmask (!%p525_p5), 253952   ;;  %v382_v48 = vld [vmem:[#allocation2 + $0x1] sm:$0x1] (!%p525_p5) }
 0x1c5   : > { %v370_v26 = vadd.f32 (!%p525_p5), %v369_v19, %v368_v20  ;;  %v388_v28 = vsel (!%p525_p5), %vm235_vm0, %v384_v22, 0.0  ;;  %v390_v30 = vsel (!%p525_p5), %vm235_vm0, %v385_v24, 0.0 }
 0x1c6   : > { %v389_v29 = vadd.f32 (!%p525_p5), %v388_v28, %v387_v27  ;;  %v392_v32 = vsel (!%p525_p5), %vm235_vm0, %v386_v25, 0.0 }
 0x1c7   : > { %v372_v31 = vadd.f32 (!%p525_p5), %v371_v23, %v370_v26 }
 0x1c8   : > { %v391_v33 = vadd.f32 (!%p525_p5), %v390_v30, %v389_v29 }
 0x1c9   : > { %v373_v34 = vrot.slane (!%p525_p5), %v372_v31, 4 }
 0x1ca   : > { %v393_v35 = vadd.f32 %v392_v32, %v391_v33 }
 0x1cb   : > { %v374_v36 = vadd.f32 %v373_v34, %v372_v31 }
 0x1cc   : > { %v394_v37 = vrot.slane %v393_v35, 4 }
 0x1cd   : > { %v375_v38 = vrot.slane %v374_v36, 2 }
 0x1ce   : > { %v395_v39 = vadd.f32 %v394_v37, %v393_v35 }
 0x1cf   : > { %v376_v40 = vadd.f32 %v375_v38, %v374_v36 }
 0x1d0   : > { %v396_v41 = vrot.slane %v395_v39, 2 }
 0x1d1   : > { %v377_v42 = vrot.slane %v376_v40, 1 }
 0x1d2   : > { %v397_v44 = vadd.f32 %v396_v41, %v395_v39 }
 0x1d3   : > { %v378_v45 = vadd.f32 %v377_v42, %v376_v40 }
 0x1d4   : > { %v398_v46 = vrot.slane %v397_v44, 1 }
 0x1d5   : > { %v379_v47 = vadd.f32 %v378_v45, %v365_v43 }
 0x1d6   : > { %v399_v49 = vadd.f32 %v398_v46, %v397_v44 }
 0x1d7   : > { %381 = vst.msk [vmem:[#allocation2] sm:$0x1] %vm380_vm4, %v379_v47 }
 0x1d8   : > { %v400_v50 = vadd.f32 %v399_v49, %v382_v48 }
 0x1da   : > { %401 = vst.msk [vmem:[#allocation2 + $0x1] sm:$0x1] %vm380_vm4, %v400_v50 }
 0x1db PF: > { %p526_p6 = scmp.ne.s32.totalorder %s638_s15, 1 }
 0x1dc   : > { %v423_v58 = vlaneseq (!%p526_p6)  ;;  %v416_v60 = vld [vmem:[%s808_s3] sm:$0x1] (!%p526_p6)  ;;  %v420_v0 = vld [vmem:[%s808_s3 + $0x1] sm:$0x1] (!%p526_p6) }
 0x1dd   : > { %409 = sbr.rel (%p526_p6) target bundleno = 513 (0x201), region = 48 }
 0x1de   : > { %v410_v51 = vld [vmem:[#allocation2] sm:$0x1] (!%p526_p6)  ;;  %v424_v59 = vshrl.u32 (!%p526_p6), %v423_v58, 7 }
 0x1df   : > { %v411_v53 = vmul.f32 (!%p526_p6), 0.03125, %v410_v51 }
 0x1e0   : > { %v425_v61 = vsub.s32 (!%p526_p6), 0, %v424_v59 }
 0x1e1   : > { %v412_v52 = vld [vmem:[#allocation2 + $0x1] sm:$0x1] (!%p526_p6)  ;;  %v414_v55 = vmul.f32 (!%p526_p6), %v411_v53, %v411_v53 }
 0x1e2   : > { %v413_v54 = vmul.f32 (!%p526_p6), 0.03125, %v412_v52 }
 0x1e4   : > { %v415_v56 = vsub.f32 %v413_v54, %v414_v55 }
 0x1e6   : > { %v417_v57 = vadd.f32 1e-05, %v415_v56 }
 0x1e8   : > { %592 = vrsqrt.f32 %v417_v57 }
 0x1f2   : > { %v593_v62 = vpop.eup %592 }
 0x1f3   : > { %v419_v63 = vmul.f32 %v593_v62, %v416_v60 }
 0x1f5   : > { %v421_v1 = vmul.f32 %v419_v63, %v411_v53  ;;  %v426_v2 = vrot.slane %v419_v63, %v425_v61 }
 0x1f7   : > { %v422_v3 = vsub.f32 %v420_v0, %v421_v1  ;;  %v427_v4 = vmul.f32 %v426_v2, %v718_v13  ;;  %v428_v5 = vmul.f32 %v426_v2, %v722_v15  ;;  %v429_v6 = vmul.f32 %v716_v12, %v426_v2 }
 0x1f8   : > { %v430_v7 = vmul.f32 %v720_v14, %v426_v2 }
 0x1f9   : > { %v434_v8 = vrot.slane %v422_v3, %v425_v61 }
 0x1fb   : > { %v435_v9 = vadd.f32 %v434_v8, %v427_v4  ;;  %v436_v10 = vadd.f32 %v434_v8, %v428_v5  ;;  %v437_v11 = vadd.f32 %v434_v8, %v429_v6  ;;  %v438_v16 = vadd.f32 %v434_v8, %v430_v7 }
 0x1fd   : > { %v439_v17 = vmax.f32 %v435_v9, 0.0  ;;  %v440_v18 = vmax.f32 %v436_v10, 0.0  ;;  %v441_v19 = vmax.f32 %v437_v11, 0.0  ;;  %v442_v20 = vmax.f32 %v438_v16, 0.0 }
 0x1ff   : > { %443 = vst.msk [vmem:[#allocation3] sm:$0xff] %vm235_vm0, %v439_v17  ;;  %444 = vst.msk [vmem:[#allocation3 + $0x8] sm:$0xff] %vm235_vm0, %v440_v18 }
 0x200   : > { %445 = vst.msk [vmem:[#allocation3 + $0x10] sm:$0xff] %vm235_vm0, %v441_v19  ;;  %446 = vst.msk [vmem:[#allocation3 + $0x18] sm:$0xff] %vm235_vm0, %v442_v20 }
 0x201 PF: > { %p770_p7 = scmp.eq.s32.totalorder %s512_s18, 1  ;;  %s649_s9 = smov [#allocation3]  }
 0x202   : > { %s456_s10 = sshll.u32 %s649_s9, 4  ;;  %s457_s10 = int_to_ptr.vmem [resolvable:$true] %s456_s10 }
 0x203   : > { %s594_s11 = scalar_lea.vmem %s457_s10, 512  ;;  %p601_p11 = scmp.lt.s32.totalorder %s457_s10, %s457_s10 }
 0x204   : > { %p595_p8 = scmp.ne.s32.totalorder %s457_s10, %s594_s11  ;;  %p602_p12 = scmp.lt.s32.totalorder %s594_s11, %s594_s11 }
 0x206   : > { %p596_p9 = pnand %p595_p8, %p770_p7  ;;  %p603_p13 = por %p602_p12, %p601_p11 }
 0x208   : > { %p597_p10 = pneg %p596_p9 }
 0x20a   : > { %p604_p0 = pnand %p603_p13, %p597_p10 }
 0x20c   : > { %607 = shalt.err (!%p604_p0)
}
 0x20d   : > { %s608_s14 = scalar_lea.hbm %s809_s4, 512 }
 0x20e   : > { %p609_p1 = scmp.ne.s32.totalorder %s809_s4, %s608_s14  ;;  %p614_p4 = scmp.lt.u32.totalorder %s608_s14, %s809_s4 }
 0x210   : > { %p610_p2 = pnand %p609_p1, %p770_p7 }
 0x212   : > { %p611_p3 = pneg %p610_p2 }
 0x214   : > { %p616_p5 = pnand %p614_p4, %p611_p3 }
 0x216   : > { %619 = shalt.err (!%p616_p5)
}
 0x217   : > { %s650_s22 = smov 128   ;;  %s651_s23 = smov 8  }
 0x218   : > { %555 = dma.vmem_to_hbm [thread:$0]  (%p770_p7), %s457_s10, 512, %s809_s4, [#allocation4], %s650_s22, %s650_s22, %s651_s23  }
 0x219   : > { %633 = dma.done.wait (%p770_p7), [#allocation4], 512  }
 0x21a   : > { %635 = vsyncadd (%p770_p7), [#allocation4], 4294966784 }
 0x21b PF: > { %s15_s17 = sadd.s32 1, %s646_s17   ;;  %s811_s15 = smov %s642_s16 }
 0x21c   : > { %p12_p6 = scmp.ge.s32.totalorder %s15_s17, 4   ;;  %s812_s16 = smov %s814_s19 }
 0x21e   :  { %14 = sbr.rel (!%p12_p6) target bundleno = 2 (0x2), region = 76 }
 0x225   :  { %472 = vsyncpa [#allocation4], 1 }
 0x226   :  { %474 = vsyncpa [#allocation4 + $0x1], 1 }

</bundles_post_ra>
